<compile_context>
chip_gen: v7x
topology: tpu7x:2x2x1
jax: 0.10.0
libtpu: 0.0.40
codegen_flags: <defaults>
</compile_context>

<pallas_src>
import math
import re

import jax
import jax.numpy as jnp
from jax.experimental import pallas as pl
from jax.experimental.pallas import tpu as pltpu

LEAKY_SLOPE = 0.1            # Activation_F == "nn.LeakyReLU(0.1)" (darknet default)
BN_EPS = 1e-5                # PyTorch BatchNorm2d default eps
LAYERS = [1, 1, 1, 1, 1]     # BasicBlock count per stage (constructor arg `layers`)


def _round_up(x, m):
    return ((x + m - 1) // m) * m


_TPU_GEN_CACHE = None


def _tpu_generation():
    """Best-effort TPU generation (5/6/7...); conservative fallback is 5."""
    global _TPU_GEN_CACHE
    if _TPU_GEN_CACHE is None:
        gen = 5
        try:
            kind = jax.devices()[0].device_kind.lower()
            m = re.search(r"(?:tpu[\s_-]*v?|v)(\d+)", kind)
            if m:
                gen = int(m.group(1))
        except Exception:
            pass
        _TPU_GEN_CACHE = gen
    return _TPU_GEN_CACHE


# ---------------------------------------------------------------------------
# Pallas kernel: fused (im2col-matmul) conv + BN + LeakyReLU (+ residual)
# ---------------------------------------------------------------------------
def _make_kernel(has_residual, k_tiled, epilogue_bf16):
    def epilogue(acc, sb_ref, r_ref, o_ref):
        sb = sb_ref[...]
        # Folded BatchNorm (eval-mode running stats): y = acc * scale + bias (f32 FMA).
        y = acc * sb[0:1, :] + sb[1:2, :]
        if epilogue_bf16:
            # v6e/v7x have bf16 VALUs: halve vld/vst pressure for the rest.
            y = y.astype(jnp.bfloat16)
        # LeakyReLU(0.1): single max per element.
        y = jnp.maximum(y, LEAKY_SLOPE * y)
        if has_residual:
            # BasicBlock: out += residual (after activation, as in the reference).
            y = y + r_ref[...].astype(y.dtype)
        o_ref[...] = y.astype(o_ref.dtype)

    if k_tiled:
        def kernel(x_ref, w_ref, sb_ref, *rest):
            if has_residual:
                r_ref, o_ref, acc_ref = rest
            else:
                r_ref = None
                o_ref, acc_ref = rest
            k = pl.program_id(2)

            @pl.when(k == 0)
            def _():
                acc_ref[...] = jnp.zeros_like(acc_ref)

            # bf16 x bf16 -> f32 accumulation: native MXU path.
            acc_ref[...] += jnp.dot(x_ref[...], w_ref[...],
                                    preferred_element_type=jnp.float32)

            @pl.when(k == pl.num_programs(2) - 1)
            def _():
                epilogue(acc_ref[...], sb_ref, r_ref, o_ref)

        return kernel

    def kernel(x_ref, w_ref, sb_ref, *rest):
        if has_residual:
            r_ref, o_ref = rest
        else:
            r_ref = None
            (o_ref,) = rest
        acc = jnp.dot(x_ref[...], w_ref[...], preferred_element_type=jnp.float32)
        epilogue(acc, sb_ref, r_ref, o_ref)

    return kernel


def _choose_tile_k(K):
    """K tile (multiple of 128, dividing K) for the big-K layers; else K (untiled)."""
    if K >= 2048 and K % 128 == 0:
        for t in (1024, 896, 768, 640, 512, 384, 256, 128):
            if K % t == 0:
                return t
    return K


def fused_conv_matmul(patches, w_mat, sb, residual=None):
    """patches: (M, K) bf16, w_mat: (K, Cout) bf16, sb: (2, Cout) f32 packed
    [scale; bias], residual: (M, Cout) bf16 or None.  Returns (M, Cout) bf16."""
    M, K = patches.shape
    Cout = w_mat.shape[1]
    gen = _tpu_generation()

    # --- K alignment to bf16 sublane packing (only the stem's K=27 triggers) ---
    K_pad = _round_up(K, 16)
    if K_pad != K:
        patches = jnp.pad(patches, ((0, 0), (0, K_pad - K)))
        w_mat = jnp.pad(w_mat, ((0, K_pad - K), (0, 0)))
        K = K_pad

    # --- M tiling: 256 rows fill the 256-wide MXU of v6e/v7x; 128 on v5e.
    #     Never pad tiny M (deep stages, M = 2..32) up to a full tile. ---------
    max_tile_m = 256 if gen >= 6 else 128
    TILE_M = min(max_tile_m, _round_up(M, 16))      # 16 = bf16 sublane packing
    M_pad = _round_up(M, TILE_M)
    if M_pad != M:
        patches = jnp.pad(patches, ((0, M_pad - M), (0, 0)))
        if residual is not None:
            residual = jnp.pad(residual, ((0, M_pad - M), (0, 0)))
    n_m = M_pad // TILE_M

    # --- N tiling: only split a single-M-tile layer across >=2 N tiles on
    #     multi-TensorCore parts (v7x); single-TC chips keep MXU-filling tiles.
    multi_tc = gen >= 7
    if multi_tc and n_m == 1 and Cout >= 256:
        TILE_N = min(512, Cout // 2)
    else:
        TILE_N = min(Cout, 512)
    assert Cout % TILE_N == 0, (Cout, TILE_N)
    n_n = Cout // TILE_N

    # --- K tiling (pipelines the big weight DMAs of layer4/5) ---------------
    TILE_K = _choose_tile_k(K)
    n_k = K // TILE_K
    k_tiled = n_k > 1

    has_residual = residual is not None
    epilogue_bf16 = gen >= 6

    if k_tiled:
        # Grid: (N, M, K) -> K innermost/"arbitrary" so weight blocks stream and
        # overlap with MXU work; output/scale/bias/residual blocks stay resident
        # across K (their index maps ignore k).
        grid = (n_n, n_m, n_k)
        x_spec = pl.BlockSpec((TILE_M, TILE_K), lambda j, i, k: (i, k))
        w_spec = pl.BlockSpec((TILE_K, TILE_N), lambda j, i, k: (k, j))
        sb_spec = pl.BlockSpec((2, TILE_N), lambda j, i, k: (0, j))
        out_spec = pl.BlockSpec((TILE_M, TILE_N), lambda j, i, k: (i, j))
        r_spec = pl.BlockSpec((TILE_M, TILE_N), lambda j, i, k: (i, j))
        scratch = [pltpu.VMEM((TILE_M, TILE_N), jnp.float32)]
        dims = ("parallel", "parallel", "arbitrary")
    else:
        # Grid: N outer, M inner -> the (K, TILE_N) weight block only depends on
        # the outer axis, so it stays VMEM-resident across all M tiles.
        grid = (n_n, n_m)
        x_spec = pl.BlockSpec((TILE_M, TILE_K), lambda j, i: (i, 0))
        w_spec = pl.BlockSpec((TILE_K, TILE_N), lambda j, i: (0, j))
        sb_spec = pl.BlockSpec((2, TILE_N), lambda j, i: (0, j))
        out_spec = pl.BlockSpec((TILE_M, TILE_N), lambda j, i: (i, j))
        r_spec = pl.BlockSpec((TILE_M, TILE_N), lambda j, i: (i, j))
        scratch = []
        dims = ("parallel", "parallel")

    in_specs = [x_spec, w_spec, sb_spec]
    args = [patches, w_mat, sb]
    if has_residual:
        in_specs.append(r_spec)
        args.append(residual)

    # Right-sized VMEM request: double-buffered block footprint + accumulator
    # + headroom, capped well below the 64 MiB physical VMEM of a v7x TC.
    x_b = TILE_M * TILE_K * 2
    w_b = TILE_K * TILE_N * 2
    sb_b = 2 * TILE_N * 4
    o_b = TILE_M * TILE_N * 2
    r_b = TILE_M * TILE_N * 2 if has_residual else 0
    acc_b = TILE_M * TILE_N * 4 if k_tiled else 0
    vmem_limit = int(min(32 * 1024 * 1024,
                         2 * (x_b + w_b + sb_b + o_b + r_b) + acc_b + (4 << 20)))

    out = pl.pallas_call(
        _make_kernel(has_residual, k_tiled, epilogue_bf16),
        out_shape=jax.ShapeDtypeStruct((M_pad, Cout), jnp.bfloat16),
        grid=grid,
        in_specs=in_specs,
        out_specs=out_spec,
        scratch_shapes=scratch,
        compiler_params=pltpu.CompilerParams(
            dimension_semantics=dims,
            vmem_limit_bytes=vmem_limit,
        ),
    )(*args)
    return out[:M]


# ---------------------------------------------------------------------------
# Plain-JAX glue: im2col, parameter construction / folding, network graph
# ---------------------------------------------------------------------------
def _im2col(x, kh, kw, stride, pad):
    """x: (N, H, W, C) -> (N*Ho*Wo, kh*kw*C), taps ordered (kh, kw) outer, C inner."""
    n, h, w, c = x.shape
    if kh == 1 and kw == 1 and stride == 1 and pad == 0:
        return x.reshape(n * h * w, c), (n, h, w)
    xp = jnp.pad(x, ((0, 0), (pad, pad), (pad, pad), (0, 0)))
    hp, wp = h + 2 * pad, w + 2 * pad
    ho = (hp - kh) // stride + 1
    wo = (wp - kw) // stride + 1
    cols = []
    for i in range(kh):
        for j in range(kw):
            cols.append(
                xp[:, i:i + (ho - 1) * stride + 1:stride,
                      j:j + (wo - 1) * stride + 1:stride, :]
            )
    patches = jnp.concatenate(cols, axis=-1)        # (n, ho, wo, kh*kw*c), bf16
    return patches.reshape(n * ho * wo, kh * kw * c), (n, ho, wo)


def conv_bn_act(x, p, ksize, stride, residual=None):
    """p: folded params {'w_mat': (K, Cout) bf16, 'sb': (2, Cout) f32}."""
    cout = p["w_mat"].shape[1]
    pad = (ksize - 1) // 2
    x = x.astype(jnp.bfloat16)                       # bf16 activations / MXU inputs
    patches, (n, ho, wo) = _im2col(x, ksize, ksize, stride, pad)
    res_flat = (residual.astype(jnp.bfloat16).reshape(n * ho * wo, cout)
                if residual is not None else None)
    y = fused_conv_matmul(patches, p["w_mat"], p["sb"], res_flat)
    return y.reshape(n, ho, wo, cout)


def _conv_params(key, kh, kw, cin, cout):
    # PyTorch init: weight ~ Normal(0, sqrt(2 / (kh*kw*out_channels))); BN gamma=1, beta=0.
    std = math.sqrt(2.0 / (kh * kw * cout))
    w = jax.random.normal(key, (kh, kw, cin, cout), jnp.float32) * std
    return {
        "w": w,
        "gamma": jnp.ones((cout,), jnp.float32),
        "beta": jnp.zeros((cout,), jnp.float32),
        "mean": jnp.zeros((cout,), jnp.float32),
        "var": jnp.ones((cout,), jnp.float32),
    }


def init_params(key, layers=LAYERS):
    keys = iter(jax.random.split(key, 256))
    params = {"stem": _conv_params(next(keys), 3, 3, 3, 32)}
    inplanes = 32
    stage_planes = [[32, 64], [64, 128], [128, 256], [256, 512], [512, 1024]]
    for si, (planes, nblocks) in enumerate(zip(stage_planes, layers)):
        stage = {"ds": _conv_params(next(keys), 3, 3, inplanes, planes[1]), "blocks": []}
        inplanes = planes[1]
        for _ in range(nblocks):
            stage["blocks"].append({
                "conv1": _conv_params(next(keys), 1, 1, inplanes, planes[0]),
                "conv2": _conv_params(next(keys), 3, 3, planes[0], planes[1]),
            })
        params[f"layer{si + 1}"] = stage
    return params


def _fold_conv(p):
    """Fold BN into a packed (2, Cout) scale/bias operand; pre-cast weights to bf16."""
    kh, kw, cin, cout = p["w"].shape
    scale = p["gamma"] / jnp.sqrt(p["var"] + BN_EPS)
    bias = p["beta"] - p["mean"] * scale
    return {
        "w_mat": p["w"].reshape(kh * kw * cin, cout).astype(jnp.bfloat16),
        "sb": jnp.stack([scale, bias], axis=0).astype(jnp.float32),
    }


def fold_params(params):
    out = {"stem": _fold_conv(params["stem"])}
    for si in range(5):
        st = params[f"layer{si + 1}"]
        out[f"layer{si + 1}"] = {
            "ds": _fold_conv(st["ds"]),
            "blocks": [{"conv1": _fold_conv(b["conv1"]),
                        "conv2": _fold_conv(b["conv2"])} for b in st["blocks"]],
        }
    return out


def darknet_forward(params, x_nhwc):
    # stem: conv 3x3 / bn / act
    x = conv_bn_act(x_nhwc, params["stem"], ksize=3, stride=1)
    outs = []
    for si in range(5):
        stage = params[f"layer{si + 1}"]
        # downsample conv 3x3 stride 2
        x = conv_bn_act(x, stage["ds"], ksize=3, stride=2)
        # residual BasicBlocks
        for blk in stage["blocks"]:
            residual = x
            out = conv_bn_act(x, blk["conv1"], ksize=1, stride=1)
            x = conv_bn_act(out, blk["conv2"], ksize=3, stride=1, residual=residual)
        outs.append(x)
    # SPP_SPPF == '' branch of the reference
    return outs[2], outs[3], outs[4]


# ---------------------------------------------------------------------------
# Pure-JAX reference for a single conv+BN+LeakyReLU (sanity check only)
# ---------------------------------------------------------------------------
def _reference_conv_bn_act(x, p, stride):
    w = p["w"]
    pad = (w.shape[0] - 1) // 2
    y = jax.lax.conv_general_dilated(
        x, w, window_strides=(stride, stride),
        padding=((pad, pad), (pad, pad)),
        dimension_numbers=("NHWC", "HWIO", "NHWC"))
    scale = p["gamma"] / jnp.sqrt(p["var"] + BN_EPS)
    bias = p["beta"] - p["mean"] * scale
    y = y * scale + bias
    return jnp.where(y > 0, y, LEAKY_SLOPE * y)


if __name__ == "__main__":
    key = jax.random.PRNGKey(0)
    pkey, xkey = jax.random.split(key)
    params = init_params(pkey)
    fparams = fold_params(params)

    # PyTorch-style NCHW input, transposed to NHWC for the kernels.
    x_nchw = jax.random.normal(xkey, (2, 3, 32, 32), jnp.float32)
    x_nhwc = jnp.transpose(x_nchw, (0, 2, 3, 1))

    # Numeric sanity check of the fused kernel on the stem layer (bf16 tolerance).
    stem_pallas = conv_bn_act(x_nhwc, fparams["stem"], ksize=3, stride=1)
    stem_ref = _reference_conv_bn_act(x_nhwc, params["stem"], stride=1)
    err = float(jnp.max(jnp.abs(stem_pallas.astype(jnp.float32) - stem_ref)))
    assert err < 0.1, f"stem conv mismatch: max abs err = {err}"

    out3, out4, out5 = jax.jit(darknet_forward)(fparams, x_nhwc)
    jax.block_until_ready((out3, out4, out5))

    assert out3.shape == (2, 4, 4, 256)     # NHWC equivalent of (2, 256, 4, 4)
    assert out4.shape == (2, 2, 2, 512)
    assert out5.shape == (2, 1, 1, 1024)
    assert bool(jnp.isfinite(out5.astype(jnp.float32)).all())

    print("KERNEL_OK")
</pallas_src>

<mosaic_0001>
module attributes {stable_mosaic.version = 11 : i64} {
  func.func @kernel(%arg0: i32, %arg1: i32, %arg2: memref<128x32xbf16, #tpu.memory_space<vmem>>, %arg3: memref<32x32xbf16, #tpu.memory_space<vmem>>, %arg4: memref<2x32xf32, #tpu.memory_space<vmem>>, %arg5: memref<128x32xbf16, #tpu.memory_space<vmem>>) attributes {dimension_semantics = [#tpu.dimension_semantics<parallel>, #tpu.dimension_semantics<parallel>], iteration_bounds = array<i64: 1, 16>, scalar_prefetch = 0 : i64, scratch_operands = 0 : i64, tpu.core_type = #tpu.core_type<tc>, window_params = [{transform_indices = @transform_0, window_bounds = array<i64: 128, 32>}, {transform_indices = @transform_1, window_bounds = array<i64: 32, 32>}, {transform_indices = @transform_2, window_bounds = array<i64: 2, 32>}, {transform_indices = @transform_3, window_bounds = array<i64: 128, 32>}]} {
    %c0 = arith.constant 0 : index
    %c0_0 = arith.constant 0 : index
    %0 = vector.load %arg2[%c0, %c0_0] : memref<128x32xbf16, #tpu.memory_space<vmem>>, vector<128x32xbf16>
    %c0_1 = arith.constant 0 : index
    %c0_2 = arith.constant 0 : index
    %1 = vector.load %arg3[%c0_1, %c0_2] : memref<32x32xbf16, #tpu.memory_space<vmem>>, vector<32x32xbf16>
    %cst = arith.constant dense<0.000000e+00> : vector<128x32xf32>
    %2 = tpu.matmul %0, %1, %cst {dimension_numbers = #tpu.dot_dimension_numbers<[1], [0], [0], [1], [0, 0, 1, 1], [], []>} : vector<128x32xbf16>, vector<32x32xbf16>, vector<128x32xf32> -> vector<128x32xf32>
    %c0_3 = arith.constant 0 : index
    %c0_4 = arith.constant 0 : index
    %3 = vector.load %arg4[%c0_3, %c0_4] : memref<2x32xf32, #tpu.memory_space<vmem>>, vector<2x32xf32>
    %4 = vector.extract_strided_slice %3 {offsets = [0, 0], sizes = [1, 32], strides = [1, 1]} : vector<2x32xf32> to vector<1x32xf32>
    %5 = vector.broadcast %4 : vector<1x32xf32> to vector<128x32xf32>
    %6 = arith.mulf %2, %5 : vector<128x32xf32>
    %7 = vector.extract_strided_slice %3 {offsets = [1, 0], sizes = [1, 32], strides = [1, 1]} : vector<2x32xf32> to vector<1x32xf32>
    %8 = vector.broadcast %7 : vector<1x32xf32> to vector<128x32xf32>
    %9 = arith.addf %6, %8 : vector<128x32xf32>
    %cst_5 = arith.constant 1.000000e-01 : f32
    %10 = vector.broadcast %cst_5 : f32 to vector<128x32xf32>
    %11 = arith.mulf %10, %9 : vector<128x32xf32>
    %12 = arith.maximumf %9, %11 : vector<128x32xf32>
    %13 = arith.truncf %12 : vector<128x32xf32> to vector<128x32xbf16>
    %c0_6 = arith.constant 0 : index
    %c0_7 = arith.constant 0 : index
    %14 = vector.load %arg5[%c0_6, %c0_7] : memref<128x32xbf16, #tpu.memory_space<vmem>>, vector<128x32xbf16>
    tpu.vector_store %arg5[%c0_6, %c0_7], %13 {strides = array<i32>} : memref<128x32xbf16, #tpu.memory_space<vmem>>, vector<128x32xbf16>,
    return
  }
  func.func @transform_0(%arg0: i32, %arg1: i32) -> (i32, i32) {
    %c0_i32 = arith.constant 0 : i32
    %c0_i32_0 = arith.constant 0 : i32
    return %arg1, %c0_i32 : i32, i32
  }
  func.func @transform_1(%arg0: i32, %arg1: i32) -> (i32, i32) {
    %c0_i32 = arith.constant 0 : i32
    %c0_i32_0 = arith.constant 0 : i32
    return %c0_i32, %arg0 : i32, i32
  }
  func.func @transform_2(%arg0: i32, %arg1: i32) -> (i32, i32) {
    %c0_i32 = arith.constant 0 : i32
    %c0_i32_0 = arith.constant 0 : i32
    return %c0_i32, %arg0 : i32, i32
  }
  func.func @transform_3(%arg0: i32, %arg1: i32) -> (i32, i32) {
    %c0_i32 = arith.constant 0 : i32
    return %arg1, %arg0 : i32, i32
  }
}

</mosaic_0001>

<bundles_post_ra>
// kernel: tpu_custom_call.1
= control target key start
LH: loop header
LB: loop body
LE: loop exit
PB: predicated region body
PF: predicated region fallthrough
CT: control target
= control target key end

     0   :  { %s857_s12 = smov 0   ;;  %s859_s13 = smov 0   ;;  %s984_s0 = inlined_call_operand.vmem [shape: bf16[2048,32], index: 0, kind: input, shape index: {}]   ;;  %s985_s1 = inlined_call_operand.vmem [shape: bf16[32,32], index: 1, kind: input, shape index: {}]   ;;  %s986_s2 = inlined_call_operand.vmem [shape: f32[2,32], index: 2, kind: input, shape index: {}]   ;;  %s987_s3 = inlined_call_operand.vmem [shape: bf16[2048,32], index: 3, kind: output, shape index: {}]  }
   0x1   :  { %s861_s14 = smov 0  }
   0x2 LB: > { %s22_s15 = sadd.s32 1, %s831_s13  ;;  %p688_p0 = scmp.ge.s32.totalorder %s835_s14, 1  ;;  %s835_s14 = sphi %s861_s14, %s13_s14   ;;  %s831_s13 = sphi %s859_s13, %s989_s13   ;;  %s827_s12 = sphi %s857_s12, %s988_s12  }
   0x3   : > { %p23_p1 = scmp.ge.s32.totalorder %s22_s15, 16  ;;  %p170_p2 = scmp.lt.s32.totalorder %s835_s14, 17 }
   0x5   : > { %s991_s15 = smov (%p23_p1, %s22_s15), 0  ;;  %p171_p3 = pnand %p688_p0, %p170_p2 }
   0x6   : > { %v803_v0 = vld [vmem:[%s985_s1] sm:$0xff] (!%p171_p3)   ;;  %s689_s18 = sshll.u32 (!%p171_p3), %s827_s12, 4  ;;  %v804_v1 = vld [vmem:[%s985_s1 + $0x8] sm:$0xff] (!%p171_p3)   ;;  %vm301_vm0 = vcmask (!%p171_p3), 261120   ;;  %v424_v10 = vlaneseq (!%p171_p3)  ;;  %vm560_vm1 = vcmask (!%p171_p3), 257024  }
   0x7   : > { %174 = sbr.rel (%p171_p3) target bundleno = 257 (0x101), region = 32  ;;  %p206_p4 = scmp.lt.s32.totalorder (!%p171_p3), %s689_s18, 255  ;;  %755 = vmatprep.subr.bf16.mxu0 (!%p171_p3), %v803_v0  ;;  %775 = vmatprep.subr.bf16.mxu1 (!%p171_p3), %v803_v0  ;;  %v423_v13 = vld [vmem:[%s986_s2] sm:$0x3] (!%p171_p3) }
   0x8   : > { %756 = vmatpush3.bf16.msra.mxu0 (!%p171_p3), %v803_v0  ;;  %777 = vmatpush3.bf16.msra.mxu1 (!%p171_p3), %v803_v0  ;;  %v425_v11 = vshrl.u32 (!%p171_p3), %v424_v10, 7 }
   0x9   : > { %757 = vmatprep.subr.bf16.mxu0 (!%p171_p3), %v804_v1  ;;  %776 = vmatprep.subr.bf16.mxu1 (!%p171_p3), %v804_v1 }
   0xa   : > { %v426_v12 = vsub.s32 (!%p171_p3), 0, %v425_v11  ;;  %v446_v14 = vsub.s32 (!%p171_p3), 1, %v425_v11 }
   0xc   : > { %758 = vmatpush3.bf16.msra.mxu0 (!%p171_p3), %v804_v1  ;;  %778 = vmatpush3.bf16.msra.mxu1 (!%p171_p3), %v804_v1  ;;  %v900_v15 = vrot.slane (!%p171_p3), %v423_v13, %v426_v12  ;;  %v902_v16 = vrot.slane (!%p171_p3), %v423_v13, %v446_v14 }
   0xe   : > { %s993_s18 = smov (!%p206_p4, %s689_s18), 255 }
   0xf   : > { %s690_s21 = sshll.u32 %s993_s18, 2 }
  0x10   : > { %s209_s24 = scalar_lea.vmem %s984_s0, %s690_s21  ;;  %s925_s29 = scalar_lea.vmem %s987_s3, %s690_s21 }
  0x11   : > { %v805_v2 = vld [vmem:[%s209_s24] sm:$0xff]   ;;  %v807_v4 = vld [vmem:[%s209_s24 + $0x8] sm:$0xff]   ;;  %v809_v6 = vld [vmem:[%s209_s24 + $0x10] sm:$0xff]  }
  0x12   : > { %v806_v3 = vld [vmem:[%s209_s24 + $0x20] sm:$0xff]   ;;  %759 = vmatprep.mubr.msk.bf16.mxu0 %vm301_vm0, %v805_v2  ;;  %v808_v5 = vld [vmem:[%s209_s24 + $0x28] sm:$0xff]   ;;  %v810_v7 = vld [vmem:[%s209_s24 + $0x30] sm:$0xff]  }
  0x13   : > { %767 = vmatprep.mubr.msk.bf16.mxu1 %vm301_vm0, %v806_v3  ;;  %760 = vmatmul.mubr.msk.bf16.vlgmr.msra.gmra.mrb[0].mxu0 %vm301_vm0, %v807_v4  ;;  %v811_v8 = vld [vmem:[%s209_s24 + $0x18] sm:$0xff]  }
  0x14   : > { %768 = vmatmul.mubr.msk.bf16.vlgmr.msra.gmra.mrb[0].mxu1 %vm301_vm0, %v808_v5  ;;  %763 = vmatprep.mubr.msk.bf16.mxu0 %vm301_vm0, %v809_v6  ;;  %v812_v9 = vld [vmem:[%s209_s24 + $0x38] sm:$0xff]  }
  0x15   : > { %771 = vmatprep.mubr.msk.bf16.mxu1 %vm301_vm0, %v810_v7 }
  0x1b   : > { %764 = vmatmul.mubr.msk.bf16.gmra.mrb[4].mxu0 %vm301_vm0, %v811_v8 }
  0x1c   : > { %772 = vmatmul.mubr.msk.bf16.gmra.mrb[4].mxu1 %vm301_vm0, %v812_v9 }
  0xe6   : > { %v761_v17 = vpop.f32.mrb[0].mxu0 }
  0xe7   : > { %v430_v18 = vmul.f32 %v761_v17, %v900_v15  ;;  %v769_v19 = vpop.f32.mrb[0].mxu1  ;;  %v360_v20 = vpop.f32.mrb[1].mxu0 }
  0xe8   : > { %v438_v21 = vmul.f32 %v769_v19, %v900_v15  ;;  %v428_v22 = vmul.f32 %v900_v15, %v360_v20  ;;  %v392_v23 = vpop.f32.mrb[1].mxu1  ;;  %v762_v24 = vpop.f32.mrb[2].mxu0 }
  0xe9   : > { %v450_v25 = vadd.f32 %v902_v16, %v430_v18  ;;  %v436_v26 = vmul.f32 %v900_v15, %v392_v23  ;;  %v431_v27 = vmul.f32 %v762_v24, %v900_v15  ;;  %v770_v28 = vpop.f32.mrb[2].mxu1  ;;  %v363_v29 = vpop.f32.mrb[3].mxu0 }
  0xea   : > { %v458_v30 = vadd.f32 %v902_v16, %v438_v21  ;;  %v448_v31 = vadd.f32 %v902_v16, %v428_v22  ;;  %v439_v32 = vmul.f32 %v770_v28, %v900_v15  ;;  %v429_v33 = vmul.f32 %v900_v15, %v363_v29  ;;  %v395_v34 = vpop.f32.mrb[3].mxu1 }
  0xeb   : > { %v466_v35 = vmul.f32 0.1, %v450_v25  ;;  %v456_v36 = vadd.f32 %v902_v16, %v436_v26  ;;  %v451_v37 = vadd.f32 %v902_v16, %v431_v27  ;;  %v437_v38 = vmul.f32 %v900_v15, %v395_v34 }
  0xec   : > { %v474_v39 = vmul.f32 0.1, %v458_v30  ;;  %v464_v40 = vmul.f32 0.1, %v448_v31  ;;  %v459_v41 = vadd.f32 %v902_v16, %v439_v32  ;;  %v449_v42 = vadd.f32 %v902_v16, %v429_v33 }
  0xed   : > { %v482_v43 = vmax.f32 %v450_v25, %v466_v35  ;;  %v472_v44 = vmul.f32 0.1, %v456_v36  ;;  %v467_v45 = vmul.f32 0.1, %v451_v37  ;;  %v457_v46 = vadd.f32 %v902_v16, %v437_v38 }
  0xee   : > { %v490_v47 = vmax.f32 %v458_v30, %v474_v39  ;;  %v480_v48 = vmax.f32 %v448_v31, %v464_v40  ;;  %v475_v49 = vmul.f32 0.1, %v459_v41  ;;  %v465_v50 = vmul.f32 0.1, %v449_v42  ;;  %v765_v51 = vpop.f32.mrb[4].mxu0 }
  0xef   : > { %v731_v52 = vpack.c.bf16 %v482_v43, %v482_v43  ;;  %v488_v53 = vmax.f32 %v456_v36, %v472_v44  ;;  %v483_v54 = vmax.f32 %v451_v37, %v467_v45  ;;  %v473_v55 = vmul.f32 0.1, %v457_v46  ;;  %v773_v56 = vpop.f32.mrb[4].mxu1  ;;  %v376_v57 = vpop.f32.mrb[5].mxu0 }
  0xf0   : > { %v739_v58 = vpack.c.bf16 %v490_v47, %v490_v47  ;;  %v729_v59 = vpack.c.bf16 %v480_v48, %v480_v48  ;;  %v491_v60 = vmax.f32 %v459_v41, %v475_v49  ;;  %v481_v61 = vmax.f32 %v449_v42, %v465_v50  ;;  %v408_v62 = vpop.f32.mrb[5].mxu1  ;;  %v766_v63 = vpop.f32.mrb[6].mxu0 }
  0xf1   : > { %563 = vst.msk [vmem:[%s925_s29 + $0x8] sm:$0xf] %vm560_vm1, %v731_v52  ;;  %v737_v0 = vpack.c.bf16 %v488_v53, %v488_v53  ;;  %v732_v1 = vpack.c.bf16 %v483_v54, %v483_v54  ;;  %v489_v2 = vmax.f32 %v457_v46, %v473_v55  ;;  %v434_v3 = vmul.f32 %v765_v51, %v900_v15  ;;  %v774_v4 = vpop.f32.mrb[6].mxu1  ;;  %v379_v5 = vpop.f32.mrb[7].mxu0 }
  0xf2   : > { %571 = vst.msk [vmem:[%s925_s29 + $0x28] sm:$0xf] %vm560_vm1, %v739_v58  ;;  %561 = vst.msk [vmem:[%s925_s29] sm:$0xf] %vm560_vm1, %v729_v59  ;;  %v740_v6 = vpack.c.bf16 %v491_v60, %v491_v60  ;;  %v730_v7 = vpack.c.bf16 %v481_v61, %v481_v61  ;;  %v442_v8 = vmul.f32 %v773_v56, %v900_v15  ;;  %v411_v10 = vpop.f32.mrb[7].mxu1 }
  0xf3   : > { %v432_v9 = vmul.f32 %v900_v15, %v376_v57  ;;  %569 = vst.msk [vmem:[%s925_s29 + $0x20] sm:$0xf] %vm560_vm1, %v737_v0  ;;  %564 = vst.msk [vmem:[%s925_s29 + $0xc] sm:$0xf] %vm560_vm1, %v732_v1  ;;  %v738_v11 = vpack.c.bf16 %v489_v2, %v489_v2  ;;  %v454_v12 = vadd.f32 %v902_v16, %v434_v3 }
  0xf4   : > { %v440_v13 = vmul.f32 %v900_v15, %v408_v62  ;;  %v435_v14 = vmul.f32 %v766_v63, %v900_v15  ;;  %572 = vst.msk [vmem:[%s925_s29 + $0x2c] sm:$0xf] %vm560_vm1, %v740_v6  ;;  %562 = vst.msk [vmem:[%s925_s29 + $0x4] sm:$0xf] %vm560_vm1, %v730_v7  ;;  %v462_v17 = vadd.f32 %v902_v16, %v442_v8 }
  0xf5   : > { %v452_v18 = vadd.f32 %v902_v16, %v432_v9  ;;  %v443_v19 = vmul.f32 %v774_v4, %v900_v15  ;;  %v433_v20 = vmul.f32 %v900_v15, %v379_v5  ;;  %570 = vst.msk [vmem:[%s925_s29 + $0x24] sm:$0xf] %vm560_vm1, %v738_v11  ;;  %v470_v21 = vmul.f32 0.1, %v454_v12 }
  0xf6   : > { %v460_v22 = vadd.f32 %v902_v16, %v440_v13  ;;  %v455_v23 = vadd.f32 %v902_v16, %v435_v14  ;;  %v441_v24 = vmul.f32 %v900_v15, %v411_v10  ;;  %v478_v25 = vmul.f32 0.1, %v462_v17 }
  0xf7   : > { %v468_v26 = vmul.f32 0.1, %v452_v18  ;;  %v463_v27 = vadd.f32 %v902_v16, %v443_v19  ;;  %v453_v28 = vadd.f32 %v902_v16, %v433_v20  ;;  %v486_v29 = vmax.f32 %v454_v12, %v470_v21 }
  0xf8   : > { %v476_v30 = vmul.f32 0.1, %v460_v22  ;;  %v471_v31 = vmul.f32 0.1, %v455_v23  ;;  %v461_v32 = vadd.f32 %v902_v16, %v441_v24  ;;  %v494_v33 = vmax.f32 %v462_v17, %v478_v25 }
  0xf9   : > { %v484_v34 = vmax.f32 %v452_v18, %v468_v26  ;;  %v479_v35 = vmul.f32 0.1, %v463_v27  ;;  %v469_v36 = vmul.f32 0.1, %v453_v28  ;;  %v735_v37 = vpack.c.bf16 %v486_v29, %v486_v29 }
  0xfa   : > { %v492_v15 = vmax.f32 %v460_v22, %v476_v30  ;;  %v487_v38 = vmax.f32 %v455_v23, %v471_v31  ;;  %v477_v39 = vmul.f32 0.1, %v461_v32  ;;  %v743_v40 = vpack.c.bf16 %v494_v33, %v494_v33 }
  0xfb   : > { %v733_v41 = vpack.c.bf16 %v484_v34, %v484_v34  ;;  %v495_v42 = vmax.f32 %v463_v27, %v479_v35  ;;  %v485_v43 = vmax.f32 %v453_v28, %v469_v36  ;;  %567 = vst.msk [vmem:[%s925_s29 + $0x18] sm:$0xf] %vm560_vm1, %v735_v37 }
  0xfc   : > { %v741_v16 = vpack.c.bf16 %v492_v15, %v492_v15  ;;  %v736_v44 = vpack.c.bf16 %v487_v38, %v487_v38  ;;  %v493_v45 = vmax.f32 %v461_v32, %v477_v39  ;;  %575 = vst.msk [vmem:[%s925_s29 + $0x38] sm:$0xf] %vm560_vm1, %v743_v40 }
  0xfd   : > { %565 = vst.msk [vmem:[%s925_s29 + $0x10] sm:$0xf] %vm560_vm1, %v733_v41  ;;  %v744_v46 = vpack.c.bf16 %v495_v42, %v495_v42  ;;  %v734_v47 = vpack.c.bf16 %v485_v43, %v485_v43 }
  0xfe   : > { %573 = vst.msk [vmem:[%s925_s29 + $0x30] sm:$0xf] %vm560_vm1, %v741_v16  ;;  %568 = vst.msk [vmem:[%s925_s29 + $0x1c] sm:$0xf] %vm560_vm1, %v736_v44  ;;  %v742_v48 = vpack.c.bf16 %v493_v45, %v493_v45 }
  0xff   : > { %576 = vst.msk [vmem:[%s925_s29 + $0x3c] sm:$0xf] %vm560_vm1, %v744_v46  ;;  %566 = vst.msk [vmem:[%s925_s29 + $0x14] sm:$0xf] %vm560_vm1, %v734_v47 }
 0x100   : > { %574 = vst.msk [vmem:[%s925_s29 + $0x34] sm:$0xf] %vm560_vm1, %v742_v48 }
 0x101 PF: > { %s13_s14 = sadd.s32 1, %s835_s14   ;;  %s988_s12 = smov %s831_s13 }
 0x102   : > { %p10_p5 = scmp.ge.s32.totalorder %s13_s14, 18   ;;  %s989_s13 = smov %s991_s15 }
 0x104   :  { %12 = sbr.rel (!%p10_p5) target bundleno = 2 (0x2), region = 68 }

</bundles_post_ra>
